<compile_context>
chip_gen: v6e
topology: v6e:2x2x1
jax: 0.10.0
libtpu: 0.0.40
codegen_flags: <defaults>
</compile_context>

<pallas_src>
import jax
import jax.numpy as jnp
from jax.experimental import pallas as pl
from jax.experimental.pallas import tpu as pltpu


def _round_up(x, m):
    return ((x + m - 1) // m) * m


def _vmem_budget_bytes():
    """Generation-aware usable VMEM (leave headroom for compiler scratch)."""
    cap = 64 * 1024 * 1024
    try:
        info = pltpu.get_tpu_info()
        cap = int(getattr(info, "vmem_capacity_bytes", cap))
    except Exception:
        pass
    return (cap * 7) // 8          # ~112 MiB on v5e/v6e, ~56 MiB on v7x


def _choose_tile_b(B, row_bytes, weight_bytes, vmem_budget):
    """VMEM-budget-driven batch tile.

    Small batches (<= 512 rows) run as one grid step: forcing >= 2 steps only
    pays ~0.35 us/step and underfills the MXU. Larger batches use MXU-aligned
    256-row tiles, grown up to 1024 rows while the budget allows and >= 2 grid
    steps remain (v7x dual-TC sharding + DMA/compute pipelining)."""
    avail = max(vmem_budget - weight_bytes, 1 << 20)
    max_rows = int(min(1024, max(16, avail // max(row_bytes, 1))))
    max_rows = max(16, (max_rows // 16) * 16)
    if B <= 512:
        return min(_round_up(B, 16), max_rows)
    tb = 256 if max_rows >= 256 else (128 if max_rows >= 128 else max_rows)
    while tb * 2 <= max_rows and tb * 2 <= 1024 and pl.cdiv(B, tb * 2) >= 2:
        tb *= 2
    return tb


def mlp_kernel(x_ref, w1_ref, b1_ref, w2_ref, b2_ref, w3_ref, b3_ref, o_ref):
    # x arrives in f32; cast to the MXU operand dtype in-register (halves
    # x-related HBM traffic vs. a wrapper-side cast; the VPU cast hides under
    # the MXU / DMA). Three fused MXU matmuls, f32 accumulation, f32 bias/ReLU.
    x = x_ref[...].astype(w1_ref.dtype)

    h1 = jnp.dot(x, w1_ref[...], preferred_element_type=jnp.float32)
    h1 = jnp.maximum(h1 + b1_ref[...], 0.0)

    h2 = jnp.dot(h1.astype(w2_ref.dtype), w2_ref[...],
                 preferred_element_type=jnp.float32)
    h2 = jnp.maximum(h2 + b2_ref[...], 0.0)

    out = jnp.dot(h2.astype(w3_ref.dtype), w3_ref[...],
                  preferred_element_type=jnp.float32)
    o_ref[...] = (out + b3_ref[...]).astype(o_ref.dtype)


def prepare_params(params, *, num_classes, compute_dtype=jnp.bfloat16):
    """One-time parameter prep (hoisted out of the per-call wrapper):
    cast weights to the MXU operand dtype, keep biases in f32, and zero-pad the
    fc3 class dim up to a multiple of 128 lanes so the kernel's final store is
    an unmasked full-lane vst."""
    w1, b1, w2, b2, w3, b3 = params
    n_pad = _round_up(max(num_classes, 128), 128)
    w3p = jnp.pad(w3, ((0, 0), (0, n_pad - w3.shape[1])))
    b3p = jnp.pad(b3, ((0, 0), (0, n_pad - b3.shape[1])))
    return (w1.astype(compute_dtype), b1.astype(jnp.float32),
            w2.astype(compute_dtype), b2.astype(jnp.float32),
            w3p.astype(compute_dtype), b3p.astype(jnp.float32))


def mlp_forward(x, prepared_params, *, data_size, num_classes, tile_b=None):
    """x: any shape whose trailing dims flatten to data_size (e.g. NCHW).
    prepared_params: output of prepare_params (bf16 weights, f32 biases,
    fc3 padded to a 128-lane-aligned class dim)."""
    w1, b1, w2, b2, w3p, b3p = prepared_params
    h1 = w1.shape[1]
    h2 = w2.shape[1]
    n_pad = w3p.shape[1]
    in_itemsize = jnp.dtype(w1.dtype).itemsize
    out_dtype = jnp.float32

    x2d = x.reshape(-1, data_size)            # x.view(-1, DATA_SIZE); stays f32
    B = x2d.shape[0]

    # --- VMEM accounting (resident weights + per-row streamed/intermediate) --
    weight_bytes = ((w1.size + w2.size + w3p.size) * in_itemsize
                    + (b1.size + b2.size + b3p.size) * 4)
    # per-row: up-to-triple-buffered f32 x block, double-buffered f32 out block,
    # plus the compiler-managed f32 + bf16 intermediates h1/h2.
    row_bytes = (3 * data_size * 4 + 2 * n_pad * 4
                 + (h1 + h2) * (4 + in_itemsize))
    budget = _vmem_budget_bytes()

    # --- batch tiling (pl.cdiv + zero-pad the last block) --------------------
    tb = _choose_tile_b(B, row_bytes, weight_bytes, budget) if tile_b is None else tile_b
    n_tiles = pl.cdiv(B, tb)
    B_pad = n_tiles * tb
    if B_pad != B:
        x2d = jnp.pad(x2d, ((0, B_pad - B), (0, 0)))

    x_bufs = 3 if n_tiles >= 3 else 2         # deeper pipeline only when useful

    est_vmem = weight_bytes + tb * row_bytes + (1 << 20)
    vmem_limit = int(min(budget, max(est_vmem * 3 // 2, 32 * 1024 * 1024)))

    flops = 2 * B_pad * (data_size * h1 + h1 * h2 + h2 * n_pad)
    bytes_accessed = (B_pad * data_size * 4          # f32 activations in
                      + weight_bytes                 # resident params
                      + B_pad * n_pad * 4)           # f32 logits out
    cost = pl.CostEstimate(flops=int(flops), transcendentals=0,
                           bytes_accessed=int(bytes_accessed))

    out = pl.pallas_call(
        mlp_kernel,
        out_shape=jax.ShapeDtypeStruct((B_pad, n_pad), out_dtype),
        grid_spec=pltpu.PrefetchScalarGridSpec(
            num_scalar_prefetch=0,
            grid=(n_tiles,),
            in_specs=[
                # streamed activation block (f32, cast in-kernel)
                pl.BlockSpec((tb, data_size), lambda i: (i, 0),
                             pipeline_mode=pl.Buffered(x_bufs)),
                # grid-invariant weights/biases: single-buffered (fetched once)
                pl.BlockSpec((data_size, h1), lambda i: (0, 0),
                             pipeline_mode=pl.Buffered(1)),
                pl.BlockSpec((1, h1), lambda i: (0, 0),
                             pipeline_mode=pl.Buffered(1)),
                pl.BlockSpec((h1, h2), lambda i: (0, 0),
                             pipeline_mode=pl.Buffered(1)),
                pl.BlockSpec((1, h2), lambda i: (0, 0),
                             pipeline_mode=pl.Buffered(1)),
                pl.BlockSpec((h2, n_pad), lambda i: (0, 0),
                             pipeline_mode=pl.Buffered(1)),
                pl.BlockSpec((1, n_pad), lambda i: (0, 0),
                             pipeline_mode=pl.Buffered(1)),
            ],
            out_specs=pl.BlockSpec((tb, n_pad), lambda i: (i, 0)),
        ),
        compiler_params=pltpu.CompilerParams(
            dimension_semantics=("parallel",),
            vmem_limit_bytes=vmem_limit),
        cost_estimate=cost,
    )(x2d, w1, b1, w2, b2, w3p, b3p)

    # Drop batch padding and the padded (zero) class columns.
    return out[:B, :num_classes]


def init_params(key, data_size, num_hidden_1, num_hidden_2, num_classes):
    """Deterministic synthetic init matching nn.Linear shapes (stored transposed: (in, out))."""
    ks = jax.random.split(key, 6)

    def lin(kw, kb, fan_in, fan_out):
        bound = 1.0 / jnp.sqrt(fan_in)
        w = jax.random.uniform(kw, (fan_in, fan_out), jnp.float32, -bound, bound)
        b = jax.random.uniform(kb, (1, fan_out), jnp.float32, -bound, bound)
        return w, b

    w1, b1 = lin(ks[0], ks[1], data_size, num_hidden_1)
    w2, b2 = lin(ks[2], ks[3], num_hidden_1, num_hidden_2)
    w3, b3 = lin(ks[4], ks[5], num_hidden_2, num_classes)
    return (w1, b1, w2, b2, w3, b3)


def ref_forward(x, params, data_size, compute_dtype=jnp.bfloat16):
    """Pure-JAX reference with the same bf16-operand / f32-accumulate recipe."""
    w1, b1, w2, b2, w3, b3 = params
    x2d = x.reshape(-1, data_size).astype(compute_dtype)
    h = jnp.dot(x2d, w1.astype(compute_dtype),
                preferred_element_type=jnp.float32) + b1
    h = jnp.maximum(h, 0.0)
    h = jnp.dot(h.astype(compute_dtype), w2.astype(compute_dtype),
                preferred_element_type=jnp.float32) + b2
    h = jnp.maximum(h, 0.0)
    out = jnp.dot(h.astype(compute_dtype), w3.astype(compute_dtype),
                  preferred_element_type=jnp.float32) + b3
    return out


if __name__ == "__main__":
    # MNIST-like small shapes: 24 images of 1x16x16 -> DATA_SIZE=256.
    # B=24 exercises the padded (non-multiple-of-16) batch path; the tile
    # chooser now runs this as a single 32-row grid step.
    B, C, H, W = 24, 1, 16, 16
    DATA_SIZE = C * H * W          # 256
    NUM_HIDDEN_1 = 128
    NUM_HIDDEN_2 = 128
    NUM_CLASSES = 10

    key = jax.random.PRNGKey(0)
    kx, kp = jax.random.split(key)
    x = jax.random.normal(kx, (B, C, H, W), dtype=jnp.float32)   # NCHW like PyTorch
    params = init_params(kp, DATA_SIZE, NUM_HIDDEN_1, NUM_HIDDEN_2, NUM_CLASSES)
    prepared = prepare_params(params, num_classes=NUM_CLASSES)   # one-time prep

    out = mlp_forward(x, prepared, data_size=DATA_SIZE, num_classes=NUM_CLASSES)
    out = jax.block_until_ready(out)

    ref = ref_forward(x, params, DATA_SIZE)
    assert out.shape == (B, NUM_CLASSES)
    max_err = float(jnp.max(jnp.abs(out - ref)))
    assert jnp.allclose(out, ref, atol=1e-2, rtol=1e-2), f"max abs err {max_err}"

    print("KERNEL_OK")
</pallas_src>

<mosaic_0001>
module attributes {stable_mosaic.version = 11 : i64} {
  func.func @mlp_kernel(%arg0: i32, %arg1: memref<32x256xf32, #tpu.memory_space<vmem>>, %arg2: memref<256x128xbf16, #tpu.memory_space<vmem>>, %arg3: memref<1x128xf32, #tpu.memory_space<vmem>>, %arg4: memref<128x128xbf16, #tpu.memory_space<vmem>>, %arg5: memref<1x128xf32, #tpu.memory_space<vmem>>, %arg6: memref<128x128xbf16, #tpu.memory_space<vmem>>, %arg7: memref<1x128xf32, #tpu.memory_space<vmem>>, %arg8: memref<32x128xf32, #tpu.memory_space<vmem>>) attributes {dimension_semantics = [#tpu.dimension_semantics<parallel>], iteration_bounds = array<i64: 1>, scalar_prefetch = 0 : i64, scratch_operands = 0 : i64, tpu.core_type = #tpu.core_type<tc>, window_params = [{pipeline_mode = #tpu.pipeline_mode<double_buffered>, transform_indices = @transform_0, window_bounds = array<i64: 32, 256>}, {pipeline_mode = #tpu.pipeline_mode<synchronous>, transform_indices = @transform_1, window_bounds = array<i64: 256, 128>}, {pipeline_mode = #tpu.pipeline_mode<synchronous>, transform_indices = @transform_2, window_bounds = array<i64: 1, 128>}, {pipeline_mode = #tpu.pipeline_mode<synchronous>, transform_indices = @transform_3, window_bounds = array<i64: 128, 128>}, {pipeline_mode = #tpu.pipeline_mode<synchronous>, transform_indices = @transform_4, window_bounds = array<i64: 1, 128>}, {pipeline_mode = #tpu.pipeline_mode<synchronous>, transform_indices = @transform_5, window_bounds = array<i64: 128, 128>}, {pipeline_mode = #tpu.pipeline_mode<synchronous>, transform_indices = @transform_6, window_bounds = array<i64: 1, 128>}, {transform_indices = @transform_7, window_bounds = array<i64: 32, 128>}]} {
    %c0 = arith.constant 0 : index
    %c0_0 = arith.constant 0 : index
    %0 = vector.load %arg1[%c0, %c0_0] : memref<32x256xf32, #tpu.memory_space<vmem>>, vector<32x256xf32>
    %1 = arith.truncf %0 : vector<32x256xf32> to vector<32x256xbf16>
    %c0_1 = arith.constant 0 : index
    %c0_2 = arith.constant 0 : index
    %2 = vector.load %arg2[%c0_1, %c0_2] : memref<256x128xbf16, #tpu.memory_space<vmem>>, vector<256x128xbf16>
    %cst = arith.constant dense<0.000000e+00> : vector<32x128xf32>
    %3 = tpu.matmul %1, %2, %cst {dimension_numbers = #tpu.dot_dimension_numbers<[1], [0], [0], [1], [0, 0, 1, 1], [], []>} : vector<32x256xbf16>, vector<256x128xbf16>, vector<32x128xf32> -> vector<32x128xf32>
    %c0_3 = arith.constant 0 : index
    %c0_4 = arith.constant 0 : index
    %4 = vector.load %arg3[%c0_3, %c0_4] : memref<1x128xf32, #tpu.memory_space<vmem>>, vector<1x128xf32>
    %5 = vector.broadcast %4 : vector<1x128xf32> to vector<32x128xf32>
    %6 = arith.addf %3, %5 : vector<32x128xf32>
    %cst_5 = arith.constant 0.000000e+00 : f32
    %7 = vector.broadcast %cst_5 : f32 to vector<32x128xf32>
    %8 = arith.maximumf %6, %7 : vector<32x128xf32>
    %9 = arith.truncf %8 : vector<32x128xf32> to vector<32x128xbf16>
    %c0_6 = arith.constant 0 : index
    %c0_7 = arith.constant 0 : index
    %10 = vector.load %arg4[%c0_6, %c0_7] : memref<128x128xbf16, #tpu.memory_space<vmem>>, vector<128x128xbf16>
    %cst_8 = arith.constant dense<0.000000e+00> : vector<32x128xf32>
    %11 = tpu.matmul %9, %10, %cst_8 {dimension_numbers = #tpu.dot_dimension_numbers<[1], [0], [0], [1], [0, 0, 1, 1], [], []>} : vector<32x128xbf16>, vector<128x128xbf16>, vector<32x128xf32> -> vector<32x128xf32>
    %c0_9 = arith.constant 0 : index
    %c0_10 = arith.constant 0 : index
    %12 = vector.load %arg5[%c0_9, %c0_10] : memref<1x128xf32, #tpu.memory_space<vmem>>, vector<1x128xf32>
    %13 = vector.broadcast %12 : vector<1x128xf32> to vector<32x128xf32>
    %14 = arith.addf %11, %13 : vector<32x128xf32>
    %cst_11 = arith.constant 0.000000e+00 : f32
    %15 = vector.broadcast %cst_11 : f32 to vector<32x128xf32>
    %16 = arith.maximumf %14, %15 : vector<32x128xf32>
    %17 = arith.truncf %16 : vector<32x128xf32> to vector<32x128xbf16>
    %c0_12 = arith.constant 0 : index
    %c0_13 = arith.constant 0 : index
    %18 = vector.load %arg6[%c0_12, %c0_13] : memref<128x128xbf16, #tpu.memory_space<vmem>>, vector<128x128xbf16>
    %cst_14 = arith.constant dense<0.000000e+00> : vector<32x128xf32>
    %19 = tpu.matmul %17, %18, %cst_14 {dimension_numbers = #tpu.dot_dimension_numbers<[1], [0], [0], [1], [0, 0, 1, 1], [], []>} : vector<32x128xbf16>, vector<128x128xbf16>, vector<32x128xf32> -> vector<32x128xf32>
    %c0_15 = arith.constant 0 : index
    %c0_16 = arith.constant 0 : index
    %20 = vector.load %arg7[%c0_15, %c0_16] : memref<1x128xf32, #tpu.memory_space<vmem>>, vector<1x128xf32>
    %21 = vector.broadcast %20 : vector<1x128xf32> to vector<32x128xf32>
    %22 = arith.addf %19, %21 : vector<32x128xf32>
    %c0_17 = arith.constant 0 : index
    %c0_18 = arith.constant 0 : index
    %23 = vector.load %arg8[%c0_17, %c0_18] : memref<32x128xf32, #tpu.memory_space<vmem>>, vector<32x128xf32>
    tpu.vector_store %arg8[%c0_17, %c0_18], %22 {strides = array<i32>} : memref<32x128xf32, #tpu.memory_space<vmem>>, vector<32x128xf32>,
    return
  }
  func.func @transform_0(%arg0: i32) -> (i32, i32) {
    %c0_i32 = arith.constant 0 : i32
    %c0_i32_0 = arith.constant 0 : i32
    return %arg0, %c0_i32 : i32, i32
  }
  func.func @transform_1(%arg0: i32) -> (i32, i32) {
    %c0_i32 = arith.constant 0 : i32
    %c0_i32_0 = arith.constant 0 : i32
    %c0_i32_1 = arith.constant 0 : i32
    return %c0_i32, %c0_i32_0 : i32, i32
  }
  func.func @transform_2(%arg0: i32) -> (i32, i32) {
    %c0_i32 = arith.constant 0 : i32
    %c0_i32_0 = arith.constant 0 : i32
    %c0_i32_1 = arith.constant 0 : i32
    return %c0_i32, %c0_i32_0 : i32, i32
  }
  func.func @transform_3(%arg0: i32) -> (i32, i32) {
    %c0_i32 = arith.constant 0 : i32
    %c0_i32_0 = arith.constant 0 : i32
    %c0_i32_1 = arith.constant 0 : i32
    return %c0_i32, %c0_i32_0 : i32, i32
  }
  func.func @transform_4(%arg0: i32) -> (i32, i32) {
    %c0_i32 = arith.constant 0 : i32
    %c0_i32_0 = arith.constant 0 : i32
    %c0_i32_1 = arith.constant 0 : i32
    return %c0_i32, %c0_i32_0 : i32, i32
  }
  func.func @transform_5(%arg0: i32) -> (i32, i32) {
    %c0_i32 = arith.constant 0 : i32
    %c0_i32_0 = arith.constant 0 : i32
    %c0_i32_1 = arith.constant 0 : i32
    return %c0_i32, %c0_i32_0 : i32, i32
  }
  func.func @transform_6(%arg0: i32) -> (i32, i32) {
    %c0_i32 = arith.constant 0 : i32
    %c0_i32_0 = arith.constant 0 : i32
    %c0_i32_1 = arith.constant 0 : i32
    return %c0_i32, %c0_i32_0 : i32, i32
  }
  func.func @transform_7(%arg0: i32) -> (i32, i32) {
    %c0_i32 = arith.constant 0 : i32
    %c0_i32_0 = arith.constant 0 : i32
    return %arg0, %c0_i32 : i32, i32
  }
}

</mosaic_0001>

<bundles_post_ra>
// kernel: tpu_custom_call.1
= control target key start
LH: loop header
LB: loop body
LE: loop exit
PB: predicated region body
PF: predicated region fallthrough
CT: control target
= control target key end

     0   :  { %12 = vsyncpa [#allocation3], 0  ;;  %s912_s0 = inlined_call_operand.hbm [shape: f32[32,256], index: 0, kind: input, shape index: {}]   ;;  %s913_s1 = inlined_call_operand.hbm [shape: bf16[256,128], index: 1, kind: input, shape index: {}]   ;;  %s914_s2 = inlined_call_operand.vmem [shape: f32[1,128], index: 2, kind: input, shape index: {}]   ;;  %s915_s3 = inlined_call_operand.hbm [shape: bf16[128,128], index: 3, kind: input, shape index: {}]   ;;  %s916_s4 = inlined_call_operand.vmem [shape: f32[1,128], index: 4, kind: input, shape index: {}]   ;;  %s917_s5 = inlined_call_operand.hbm [shape: bf16[128,128], index: 5, kind: input, shape index: {}]   ;;  %s918_s6 = inlined_call_operand.vmem [shape: f32[1,128], index: 6, kind: input, shape index: {}]   ;;  %s919_s7 = inlined_call_operand.hbm [shape: f32[32,128], index: 7, kind: output, shape index: {}]  }
   0x1   :  { %13 = vsyncpa [#allocation6], 0 }
   0x2   :  { %14 = vsyncpa [#allocation9], 0 }
   0x3   :  { %15 = vsyncpa [#allocation4], 0  ;;  %s828_s24 = smov [#allocation5]  }
   0x4   :  { %s33_s25 = sshll.u32 %s828_s24, 4  ;;  %s34_s25 = int_to_ptr.vmem [resolvable:$true] %s33_s25 }
   0x5   :  { %s728_s26 = scalar_lea.vmem %s34_s25, 2048  ;;  %p733_p1 = scmp.lt.s32.totalorder %s34_s25, %s34_s25 }
   0x6   :  { %p729_p0 = scmp.ne.s32.totalorder %s34_s25, %s728_s26  ;;  %p734_p2 = scmp.lt.s32.totalorder %s728_s26, %s728_s26 }
   0x8   :  { %p735_p3 = por %p734_p2, %p733_p1 }
   0xa   :  { %p736_p4 = pnand %p735_p3, %p729_p0 }
   0xc   :  { %739 = shalt.err (!%p736_p4)
}
   0xd   :  { %s829_s27 = smov 64   ;;  %s830_s28 = smov 4  }
   0xe   :  { %39 = dma.hbm_to_vmem [thread:$0]  %s913_s1, 2048, %s34_s25, [#allocation6], %s829_s27, %s829_s27, %s830_s28  }
   0xf   :  { %s831_s8 = smov [#allocation2]  }
  0x10   :  { %s21_s9 = sshll.u32 %s831_s8, 4  ;;  %s22_s9 = int_to_ptr.vmem [resolvable:$true] %s21_s9 }
  0x11   :  { %s748_s10 = scalar_lea.vmem %s22_s9, 1024  ;;  %p753_p6 = scmp.lt.s32.totalorder %s22_s9, %s22_s9 }
  0x12   :  { %p749_p5 = scmp.ne.s32.totalorder %s22_s9, %s748_s10  ;;  %p754_p7 = scmp.lt.s32.totalorder %s748_s10, %s748_s10 }
  0x14   :  { %p755_p8 = por %p754_p7, %p753_p6 }
  0x16   :  { %p756_p9 = pnand %p755_p8, %p749_p5 }
  0x18   :  { %759 = shalt.err (!%p756_p9)
}
  0x19   :  { %s832_s11 = smov 256   ;;  %s833_s12 = smov 16  }
  0x1a   :  { %27 = dma.hbm_to_vmem [thread:$0]  %s912_s0, 1024, %s22_s9, [#allocation3], %s832_s11, %s832_s11, %s833_s12  }
  0x1b   :  { %s834_s15 = smov [#allocation7]   ;;  %s835_s17 = smov [#allocation8]  }
  0x1c   :  { %s47_s16 = sshll.u32 %s834_s15, 4  ;;  %s61_s1 = sshll.u32 %s835_s17, 4  ;;  %s48_s16 = int_to_ptr.vmem [resolvable:$true] %s47_s16  ;;  %s62_s1 = int_to_ptr.vmem [resolvable:$true] %s61_s1 }
  0x1d   :  { %s768_s18 = scalar_lea.vmem %s48_s16, 1024  ;;  %p773_p11 = scmp.lt.s32.totalorder %s48_s16, %s48_s16 }
  0x1e   :  { %p769_p10 = scmp.ne.s32.totalorder %s48_s16, %s768_s18  ;;  %p774_p12 = scmp.lt.s32.totalorder %s768_s18, %s768_s18 }
  0x20   :  { %p775_p13 = por %p774_p12, %p773_p11 }
  0x22   :  { %p776_p0 = pnand %p775_p13, %p769_p10 }
  0x24   :  { %779 = shalt.err (!%p776_p0)
}
  0x25   :  { %53 = dma.hbm_to_vmem [thread:$0]  %s915_s3, 1024, %s48_s16, [#allocation6], %s829_s27, %s829_s27, %s830_s28  }
  0x26   :  { %s788_s0 = scalar_lea.vmem %s62_s1, 1024  ;;  %p793_p2 = scmp.lt.s32.totalorder %s62_s1, %s62_s1 }
  0x27   :  { %p789_p1 = scmp.ne.s32.totalorder %s62_s1, %s788_s0  ;;  %p794_p3 = scmp.lt.s32.totalorder %s788_s0, %s788_s0 }
  0x29   :  { %p795_p4 = por %p794_p3, %p793_p2 }
  0x2b   :  { %p796_p5 = pnand %p795_p4, %p789_p1 }
  0x2d   :  { %799 = shalt.err (!%p796_p5)
}
  0x2e   :  { %67 = dma.hbm_to_vmem [thread:$0]  %s917_s5, 1024, %s62_s1, [#allocation9], %s829_s27, %s829_s27, %s830_s28  }
  0x2f   :  { %820 = dma.done.wait [#allocation3], 1024  }
  0x30   :  { %821 = vsyncadd [#allocation3], 4294966272 }
  0x31   :  { %822 = dma.done.wait [#allocation6], 3072  }
  0x32   :  { %823 = vsyncadd [#allocation6], 4294964224 }
  0x33   :  { %824 = dma.done.wait [#allocation9], 1024  }
  0x34   :  { %825 = vsyncadd [#allocation9], 4294966272  ;;  %v688_v0 = vld [vmem:[#allocation5 + $0x78] sm:$0xff]   ;;  %v690_v2 = vld [vmem:[#allocation5 + $0x70] sm:$0xff]  }
  0x35   :  { %v689_v1 = vld [vmem:[#allocation5 + $0x38] sm:$0xff]   ;;  %589 = vmatprep.subr.bf16.mxu0 %v688_v0  ;;  %v691_v3 = vld [vmem:[#allocation5 + $0x30] sm:$0xff]   ;;  %v692_v4 = vld [vmem:[#allocation5 + $0x68] sm:$0xff]  }
  0x36   :  { %590 = vmatpush3.bf16.msra.mxu0 %v689_v1  ;;  %v693_v5 = vld [vmem:[#allocation5 + $0x28] sm:$0xff]   ;;  %v694_v6 = vld [vmem:[#allocation5 + $0x60] sm:$0xff]   ;;  %v696_v8 = vld [vmem:[#allocation5 + $0x58] sm:$0xff]  }
  0x37   :  { %591 = vmatprep.subr.bf16.mxu0 %v690_v2  ;;  %v695_v7 = vld [vmem:[#allocation5 + $0x20] sm:$0xff]   ;;  %v697_v9 = vld [vmem:[#allocation5 + $0x18] sm:$0xff]   ;;  %v698_v10 = vld [vmem:[#allocation5 + $0x50] sm:$0xff]  }
  0x38   :  { %v84_v11 = vld [vmem:[#allocation2 + $0x8] sm:$0xff]  ;;  %v86_v12 = vld [vmem:[#allocation2 + $0x18] sm:$0xff]  ;;  %v699_v14 = vld [vmem:[#allocation5 + $0x10] sm:$0xff]  }
  0x39   :  { %v92_v13 = vpack.c.bf16 %v86_v12, %v84_v11  ;;  %v700_v15 = vld [vmem:[#allocation5 + $0x48] sm:$0xff]   ;;  %v704_v16 = vld [vmem:[#allocation7 + $0x38] sm:$0xff]   ;;  %v705_v17 = vld [vmem:[#allocation7 + $0x30] sm:$0xff]  }
  0x3a   :  { %592 = vmatpush3.bf16.msra.mxu0 %v691_v3  ;;  %v701_v18 = vld [vmem:[#allocation5 + $0x8] sm:$0xff]   ;;  %637 = vmatprep.subr.bf16.mxu1 %v704_v16  ;;  %v702_v20 = vld [vmem:[#allocation5 + $0x40] sm:$0xff]   ;;  %v85_v23 = vld [vmem:[#allocation2 + $0x10] sm:$0xff] }
  0x3b   :  { %593 = vmatprep.subr.bf16.mxu0 %v692_v4  ;;  %262 = vmatprep.mubr.bf16.mxu0 %v92_v13  ;;  %v706_v19 = vld [vmem:[#allocation7 + $0x28] sm:$0xff]   ;;  %v703_v21 = vld [vmem:[#allocation5] sm:$0xff]   ;;  %v90_v25 = vld [vmem:[#allocation2 + $0x38] sm:$0xff] }
  0x3c   :  { %638 = vmatpush3.bf16.msra.mxu1 %v704_v16  ;;  %v83_v22 = vld [vmem:[#allocation2] sm:$0xff]  ;;  %v88_v24 = vld [vmem:[#allocation2 + $0x28] sm:$0xff]  ;;  %v89_v29 = vld [vmem:[#allocation2 + $0x30] sm:$0xff] }
  0x3d   :  { %639 = vmatprep.subr.bf16.mxu1 %v705_v17  ;;  %v91_v26 = vpack.c.bf16 %v85_v23, %v83_v22  ;;  %v94_v27 = vpack.c.bf16 %v90_v25, %v88_v24  ;;  %v87_v28 = vld [vmem:[#allocation2 + $0x20] sm:$0xff]  ;;  %v708_v32 = vld [vmem:[#allocation7 + $0x18] sm:$0xff]   ;;  %v709_v33 = vld [vmem:[#allocation7 + $0x10] sm:$0xff]  }
  0x3e   :  { %594 = vmatpush3.bf16.msra.mxu0 %v693_v5  ;;  %v93_v30 = vpack.c.bf16 %v89_v29, %v87_v28  ;;  %v707_v31 = vld [vmem:[#allocation7 + $0x20] sm:$0xff]   ;;  %v710_v34 = vld [vmem:[#allocation7 + $0x8] sm:$0xff]   ;;  %v712_v36 = vld [vmem:[#allocation8 + $0x38] sm:$0xff]  }
  0x3f   :  { %595 = vmatprep.subr.bf16.mxu0 %v694_v6  ;;  %v711_v35 = vld [vmem:[#allocation7] sm:$0xff]   ;;  %v713_v37 = vld [vmem:[#allocation8 + $0x30] sm:$0xff]   ;;  %v714_v38 = vld [vmem:[#allocation8 + $0x28] sm:$0xff]  }
  0x40   :  { %640 = vmatpush3.bf16.msra.mxu1 %v705_v17  ;;  %v715_v39 = vld [vmem:[#allocation8 + $0x20] sm:$0xff]   ;;  %v716_v40 = vld [vmem:[#allocation8 + $0x18] sm:$0xff]   ;;  %v717_v0 = vld [vmem:[#allocation8 + $0x10] sm:$0xff]  }
  0x41   :  { %641 = vmatprep.subr.bf16.mxu1 %v706_v19  ;;  %v554_v45 = vld [vmem:[%s914_s2] ss:$0 sm:$0xff]  ;;  %v718_v1 = vld [vmem:[#allocation8 + $0x8] sm:$0xff]  }
  0x42   :  { %596 = vmatpush3.bf16.msra.mxu0 %v695_v7  ;;  %v719_v2 = vld [vmem:[#allocation8] sm:$0xff]  }
  0x43   :  { %597 = vmatprep.subr.bf16.mxu0 %v696_v8  ;;  %v571_v5 = vld [vmem:[%s916_s4] ss:$0 sm:$0xff]  ;;  %s836_s4 = smov [#allocation10]  }
  0x44   :  { %642 = vmatpush3.bf16.msra.mxu1 %v706_v19  ;;  %s540_s26 = sshll.u32 %s836_s4, 4  ;;  %s541_s26 = int_to_ptr.vmem [resolvable:$true] %s540_s26 }
  0x45   :  { %643 = vmatprep.subr.bf16.mxu1 %v707_v31  ;;  %s800_s27 = scalar_lea.vmem %s541_s26, 512  ;;  %p805_p7 = scmp.lt.s32.totalorder %s541_s26, %s541_s26 }
  0x46   :  { %598 = vmatpush3.bf16.msra.mxu0 %v697_v9  ;;  %p801_p6 = scmp.ne.s32.totalorder %s541_s26, %s800_s27  ;;  %p806_p8 = scmp.lt.s32.totalorder %s800_s27, %s800_s27 }
  0x47   :  { %599 = vmatprep.subr.bf16.mxu0 %v698_v10 }
  0x48   :  { %644 = vmatpush3.bf16.msra.mxu1 %v707_v31  ;;  %p807_p9 = por %p806_p8, %p805_p7 }
  0x49   :  { %645 = vmatprep.subr.bf16.mxu1 %v708_v32 }
  0x4a   :  { %600 = vmatpush3.bf16.msra.mxu0 %v699_v14  ;;  %p808_p10 = pnand %p807_p9, %p801_p6 }
  0x4b   :  { %601 = vmatprep.subr.bf16.mxu0 %v700_v15 }
  0x4c   :  { %646 = vmatpush3.bf16.msra.mxu1 %v708_v32 }
  0x4d   :  { %647 = vmatprep.subr.bf16.mxu1 %v709_v33 }
  0x4e   :  { %602 = vmatpush3.bf16.msra.mxu0 %v701_v18  ;;  %v580_v18 = vld [vmem:[%s918_s6] ss:$0 sm:$0xff] }
  0x4f   :  { %603 = vmatprep.subr.bf16.mxu0 %v702_v20 }
  0x50   :  { %648 = vmatpush3.bf16.msra.mxu1 %v709_v33 }
  0x51   :  { %649 = vmatprep.subr.bf16.mxu1 %v710_v34 }
  0x52   :  { %604 = vmatpush3.bf16.msra.mxu0 %v703_v21 }
  0x53   :  { %657 = vmatprep.subr.bf16.mxu0 %v712_v36 }
  0x54   :  { %650 = vmatpush3.bf16.msra.mxu1 %v710_v34 }
  0x55   :  { %263 = vmatmul.mubr.bf16.vlgmr.msra.gmra.mxu0 %v91_v26  ;;  %651 = vmatprep.subr.bf16.mxu1 %v711_v35 }
  0x56   :  { %270 = vmatprep.mubr.bf16.mxu0 %v94_v27  ;;  %658 = vmatpush3.bf16.msra.mxu0 %v712_v36 }
  0x57   :  { %659 = vmatprep.subr.bf16.mxu0 %v713_v37 }
  0x58   :  { %652 = vmatpush3.bf16.msra.mxu1 %v711_v35 }
  0x5a   :  { %660 = vmatpush3.bf16.msra.mxu0 %v713_v37 }
  0x5b   :  { %661 = vmatprep.subr.bf16.mxu0 %v714_v38 }
  0x5d   :  { %271 = vmatmul.mubr.bf16.gmra.mxu0 %v93_v30 }
  0x5e   :  { %662 = vmatpush3.bf16.msra.mxu0 %v714_v38 }
  0x5f   :  { %663 = vmatprep.subr.bf16.mxu0 %v715_v39 }
  0x62   :  { %664 = vmatpush3.bf16.msra.mxu0 %v715_v39 }
  0x63   :  { %665 = vmatprep.subr.bf16.mxu0 %v716_v40 }
  0x66   :  { %666 = vmatpush3.bf16.msra.mxu0 %v716_v40 }
  0x67   :  { %667 = vmatprep.subr.bf16.mxu0 %v717_v0 }
  0x6a   :  { %668 = vmatpush3.bf16.msra.mxu0 %v717_v0 }
  0x6b   :  { %669 = vmatprep.subr.bf16.mxu0 %v718_v1 }
  0x6e   :  { %670 = vmatpush3.bf16.msra.mxu0 %v718_v1 }
  0x6f   :  { %671 = vmatprep.subr.bf16.mxu0 %v719_v2 }
  0x72   :  { %672 = vmatpush3.bf16.msra.mxu0 %v719_v2 }
 0x115   :  { %v605_v41 = vpop.f32.mrf.mxu0 }
 0x117   :  { %v606_v42 = vpop.f32.mrf.mxu0 }
 0x118   :  { %v607_v43 = vadd.f32 %v606_v42, %v605_v41 }
 0x119   :  { %v608_v44 = vpop.f32.mrf.mxu0 }
 0x11a   :  { %v265_v48 = vadd.f32 %v607_v43, %v554_v45 }
 0x11b   :  { %v609_v46 = vpop.f32.mrf.mxu0 }
 0x11c   :  { %v610_v47 = vadd.f32 %v609_v46, %v608_v44  ;;  %v279_v53 = vmax.f32 %v265_v48, 0.0 }
 0x11d   :  { %v611_v49 = vpop.f32.mrf.mxu0 }
 0x11e   :  { %v268_v50 = vadd.f32 %v610_v47, %v554_v45 }
 0x11f   :  { %v612_v51 = vpop.f32.mrf.mxu0 }
 0x120   :  { %v613_v52 = vadd.f32 %v612_v51, %v611_v49  ;;  %v280_v54 = vmax.f32 %v268_v50, 0.0 }
 0x121   :  { %v614_v55 = vpop.f32.mrf.mxu0 }
 0x122   :  { %v283_v56 = vpack.c.bf16 %v280_v54, %v279_v53  ;;  %v273_v58 = vadd.f32 %v613_v52, %v554_v45 }
 0x123   :  { %v615_v57 = vpop.f32.mrf.mxu0 }
 0x124   :  { %v616_v59 = vadd.f32 %v615_v57, %v614_v55  ;;  %653 = vmatprep.mubr.bf16.mxu1 %v283_v56  ;;  %v281_v61 = vmax.f32 %v273_v58, 0.0 }
 0x126   :  { %v276_v60 = vadd.f32 %v616_v59, %v554_v45 }
 0x128   :  { %v282_v62 = vmax.f32 %v276_v60, 0.0 }
 0x12a   :  { %v284_v63 = vpack.c.bf16 %v282_v62, %v281_v61 }
 0x12c   :  { %654 = vmatmul.mubr.bf16.vlgmr.msra.gmra.mxu1 %v284_v63 }
 0x1ec   :  { %v655_v3 = vpop.f32.mrf.mxu1 }
 0x1ed   :  { %v399_v9 = vadd.f32 %v655_v3, %v571_v5 }
 0x1ee   :  { %v390_v4 = vpop.f32.mrf.mxu1 }
 0x1ef   :  { %v391_v7 = vadd.f32 %v571_v5, %v390_v4  ;;  %v407_v15 = vmax.f32 %v399_v9, 0.0 }
 0x1f0   :  { %v656_v6 = vpop.f32.mrf.mxu1 }
 0x1f1   :  { %v402_v8 = vadd.f32 %v656_v6, %v571_v5  ;;  %v405_v13 = vmax.f32 %v391_v7, 0.0 }
 0x1f2   :  { %v393_v10 = vpop.f32.mrf.mxu1 }
 0x1f3   :  { %v394_v11 = vadd.f32 %v571_v5, %v393_v10  ;;  %v408_v12 = vmax.f32 %v402_v8, 0.0 }
 0x1f5   :  { %v406_v14 = vmax.f32 %v394_v11, 0.0  ;;  %v410_v17 = vpack.c.bf16 %v408_v12, %v407_v15 }
 0x1f7   :  { %v409_v16 = vpack.c.bf16 %v406_v14, %v405_v13 }
 0x1f9   :  { %673 = vmatprep.mubr.bf16.mxu0 %v409_v16 }
 0x1fa   :  { %674 = vmatmul.mubr.bf16.vlgmr.msra.gmra.mxu0 %v410_v17 }
 0x2ba   :  { %v675_v19 = vpop.f32.mrf.mxu0 }
 0x2bb   :  { %v525_v20 = vadd.f32 %v675_v19, %v580_v18 }
 0x2bc   :  { %v516_v21 = vpop.f32.mrf.mxu0 }
 0x2bd   :  { %533 = vst [vmem:[#allocation10 + $0x10] sm:$0xff] %v525_v20  ;;  %v517_v22 = vadd.f32 %v580_v18, %v516_v21 }
 0x2be   :  { %v676_v23 = vpop.f32.mrf.mxu0 }
 0x2bf   :  { %531 = vst [vmem:[#allocation10] sm:$0xff] %v517_v22  ;;  %v528_v24 = vadd.f32 %v676_v23, %v580_v18 }
 0x2c0   :  { %v519_v25 = vpop.f32.mrf.mxu0 }
 0x2c1   :  { %534 = vst [vmem:[#allocation10 + $0x18] sm:$0xff] %v528_v24  ;;  %v520_v26 = vadd.f32 %v580_v18, %v519_v25 }
 0x2c3   :  { %532 = vst [vmem:[#allocation10 + $0x8] sm:$0xff] %v520_v26 }
 0x2c4   :  { %811 = shalt.err (!%p808_p10)
}
 0x2c5   :  { %s837_s6 = smov 128   ;;  %s838_s28 = smov 8  }
 0x2c6   :  { %546 = dma.vmem_to_hbm [thread:$0]  %s541_s26, 512, %s919_s7, [#allocation4], %s837_s6, %s837_s6, %s838_s28  }
 0x2c7   :  { %826 = dma.done.wait [#allocation4], 512  }
 0x2c8   :  { %827 = vsyncadd [#allocation4], 4294966784 }
 0x2c9   :  { %550 = vsyncpa [#allocation3], 1 }
 0x2ca   :  { %551 = vsyncpa [#allocation6], 1 }
 0x2cb   :  { %552 = vsyncpa [#allocation9], 1 }
 0x2cc   :  { %553 = vsyncpa [#allocation4], 1 }

</bundles_post_ra>
